<compile_context>
chip_gen: v5e
topology: v5e:2x2
jax: 0.10.0
libtpu: 0.0.40
codegen_flags: <defaults>
</compile_context>

<pallas_src>
import functools

import jax
import jax.numpy as jnp
from jax import lax
from jax.experimental import pallas as pl
from jax.experimental.pallas import tpu as pltpu


def _shift(v, k):
    """out[i] = v[(i + k) % n] along axis 0 (sublane rotation on the XLU)."""
    n = v.shape[0]
    return pltpu.roll(v, shift=(n - k) % n, axis=0)


def _cnn_kernel(x3_ref, w1_ref, b1_ref, w2_ref, b2_ref,
                fw1_ref, fb1_ref, fw2_ref, fb2_ref,
                out_ref, s2_ref, *, L, L4, compute_dtype):
    n1 = x3_ref.shape[0]            # Bblk * L rows (channels-last)
    Bblk = out_ref.shape[0]
    C1 = w1_ref.shape[1]            # 16
    C2 = w2_ref.shape[1]            # 32
    cdt = compute_dtype

    # position of each row within its sample (for conv boundary masking)
    pos = lax.rem(lax.broadcasted_iota(jnp.int32, (n1, 1), 0), L)

    # ---------------- conv1 (1 -> C1, k=3, pad=1) + ReLU -------------------
    # im2col (x3 = [x[l-1], x[l], x[l+1]]) was built in the wrapper, so conv1
    # is a single MXU push instead of three VALU broadcast-muls.
    h1 = jnp.dot(x3_ref[...], w1_ref[...], preferred_element_type=jnp.float32)
    h1 = jnp.maximum(h1 + b1_ref[...], 0.0)                       # (n1, C1) f32

    # ---------------- maxpool1 (k=2, s=2), kept un-compacted ---------------
    # pair-max lands at even rows (pos % 2 == 0); odd rows are dead weight.
    m1 = jnp.maximum(h1, _shift(h1, 1))                           # (n1, C1)

    # ---------------- conv2 (C1 -> C2, k=3, pad=1) + ReLU ------------------
    # pooled neighbours j-1 / j+1 live at un-compacted rows r-2 / r+2;
    # boundary masking via `pos` kills cross-sample wrap-around from roll.
    # The three taps are fused into a single K = 3*C1 matmul.
    left = jnp.where(pos >= 2, _shift(m1, -2), 0.0)
    right = jnp.where(pos < L - 2, _shift(m1, 2), 0.0)
    x2 = jnp.concatenate([left, m1, right], axis=1).astype(cdt)   # (n1, 3*C1)
    h2 = jnp.dot(x2, w2_ref[...], preferred_element_type=jnp.float32)
    h2 = jnp.maximum(h2 + b2_ref[...], 0.0)                       # (n1, C2)

    # ---------------- maxpool2: rows with pos % 4 == 0 hold pooled values --
    m2 = jnp.maximum(h2, _shift(h2, 2))
    s2_ref[...] = m2

    # ---------------- fc1 + ReLU -------------------------------------------
    # Gather the L4 valid rows per sample (strided sublane slices of the
    # scratch) into one lane-dense (Bblk, L4*C2) slab and do a single
    # MXU-shaped K = L4*C2 contraction.
    slab = jnp.concatenate(
        [s2_ref[pl.ds(4 * l, Bblk, L), :] for l in range(L4)], axis=1)
    f1 = jnp.dot(slab.astype(cdt), fw1_ref[...],
                 preferred_element_type=jnp.float32)
    f1 = jnp.maximum(f1 + fb1_ref[...], 0.0)                      # (Bblk, H)
    # TODO(synk): dropout is identity here (inference / eval mode).

    # ---------------- fc2 (lane-padded output, sliced in the wrapper) ------
    out = jnp.dot(f1.astype(cdt), fw2_ref[...],
                  preferred_element_type=jnp.float32) + fb2_ref[...]
    out_ref[...] = out.astype(out_ref.dtype)


def base_cnn_forward(x, params, *, block_batch=None, compute_dtype=jnp.bfloat16):
    """x: (B, input_dim) float32 -> logits (B, num_classes)."""
    w1, b1, w2, b2, fw1, fb1, fw2, fb2 = params
    B, L = x.shape
    C1 = w1.shape[0]
    C2 = w2.shape[0]
    H, flat = fw1.shape
    NC = fw2.shape[0]
    assert L % 4 == 0 and L >= 4, "input_dim must be a multiple of 4"
    L4 = L // 4
    assert flat == C2 * L4

    # Batch block: sublane-aligned (multiple of 8) when possible, as large as
    # divisibility allows up to ~4K activation rows per step (amortizes the
    # ~0.35 us per-grid-step overhead while keeping the per-block working set
    # at a few MiB -- comfortably inside the default scoped-VMEM limit on
    # v5e/v6e/v7x with double buffering).
    if block_batch is None:
        if B % 8 == 0:
            block_batch = 8
            while B % (block_batch * 2) == 0 and block_batch * 2 * L <= 4096:
                block_batch *= 2
        else:
            block_batch = B
    Bblk = block_batch
    assert B % Bblk == 0
    grid = (B // Bblk,)

    cdt = compute_dtype
    f32 = jnp.float32

    # ---- conv1 im2col in the wrapper (layout plumbing only) ----
    xf = x.astype(f32)
    x_prev = jnp.pad(xf, ((0, 0), (1, 0)))[:, :L]
    x_next = jnp.pad(xf, ((0, 0), (0, 1)))[:, 1:]
    x3 = jnp.stack([x_prev, xf, x_next], axis=-1).reshape(B * L, 3).astype(cdt)

    # ---- parameter relayout (channels-last, fused taps, lane-dense fc2) ----
    w1_k = jnp.transpose(w1[:, 0, :], (1, 0)).astype(cdt)                  # (3, C1)
    w2_k = jnp.transpose(w2, (2, 1, 0)).reshape(3 * C1, C2).astype(cdt)    # (3*C1, C2)
    fw1_k = jnp.transpose(fw1.reshape(H, C2, L4), (2, 1, 0)
                          ).reshape(L4 * C2, H).astype(cdt)                # (L4*C2, H)
    NCp = ((NC + 127) // 128) * 128
    fw2_k = jnp.zeros((H, NCp), cdt).at[:, :NC].set(fw2.T.astype(cdt))     # (H, NCp)
    fb2_k = jnp.zeros((1, NCp), f32).at[:, :NC].set(fb2.astype(f32))
    b1_k = b1.reshape(1, C1).astype(f32)
    b2_k = b2.reshape(1, C2).astype(f32)
    fb1_k = fb1.reshape(1, H).astype(f32)

    kernel = functools.partial(_cnn_kernel, L=L, L4=L4, compute_dtype=cdt)

    def full(shape):
        return pl.BlockSpec(shape, lambda i, s=shape: (0,) * len(s))

    in_specs = [
        pl.BlockSpec((Bblk * L, 3), lambda i: (i, 0)),   # x3: blocked over batch
        full((3, C1)), full((1, C1)),                    # conv1 params
        full((3 * C1, C2)), full((1, C2)),               # conv2 params (fused taps)
        full((L4 * C2, H)), full((1, H)),                # fc1 params
        full((H, NCp)), full((1, NCp)),                  # fc2 params (lane-padded)
    ]
    out_spec = pl.BlockSpec((Bblk, NCp), lambda i: (i, 0))

    fn = pl.pallas_call(
        kernel,
        grid=grid,
        in_specs=in_specs,
        out_specs=out_spec,
        out_shape=jax.ShapeDtypeStruct((B, NCp), jnp.float32),
        scratch_shapes=[pltpu.VMEM((Bblk * L, C2), jnp.float32)],
        compiler_params=pltpu.CompilerParams(
            dimension_semantics=("parallel",)),
    )
    out = fn(x3, w1_k, b1_k, w2_k, b2_k, fw1_k, fb1_k, fw2_k, fb2_k)
    return out[:, :NC]


def reference_forward(x, params):
    """Pure-JAX reference matching the PyTorch forward (NCL layout)."""
    w1, b1, w2, b2, fw1, fb1, fw2, fb2 = params
    B, L = x.shape
    h = x[:, None, :]                                          # (B,1,L)

    def conv1d(a, w, b):
        Bq, Ci, Lq = a.shape
        ap = jnp.pad(a, ((0, 0), (0, 0), (1, 1)))
        y = jnp.zeros((Bq, w.shape[0], Lq), jnp.float32)
        for k in range(3):
            y = y + jnp.einsum('oi,bil->bol', w[:, :, k], ap[:, :, k:k + Lq])
        return y + b[None, :, None]

    def pool(a):
        Bq, Cq, Lq = a.shape
        return jnp.max(a.reshape(Bq, Cq, Lq // 2, 2), axis=-1)

    h = pool(jax.nn.relu(conv1d(h, w1, b1)))
    h = pool(jax.nn.relu(conv1d(h, w2, b2)))
    h = h.reshape(B, -1)
    h = jax.nn.relu(h @ fw1.T + fb1)
    return h @ fw2.T + fb2


if __name__ == "__main__":
    B, L, NC = 16, 16, 5                 # batch, input_dim, num_classes
    C1, C2, H = 16, 32, 128
    flat = C2 * (L // 4)                 # 128

    key = jax.random.PRNGKey(0)
    ks = jax.random.split(key, 9)
    x = jax.random.normal(ks[0], (B, L), jnp.float32)
    w1 = 0.30 * jax.random.normal(ks[1], (C1, 1, 3), jnp.float32)
    b1 = 0.10 * jax.random.normal(ks[2], (C1,), jnp.float32)
    w2 = 0.10 * jax.random.normal(ks[3], (C2, C1, 3), jnp.float32)
    b2 = 0.10 * jax.random.normal(ks[4], (C2,), jnp.float32)
    fw1 = 0.05 * jax.random.normal(ks[5], (H, flat), jnp.float32)
    fb1 = 0.10 * jax.random.normal(ks[6], (H,), jnp.float32)
    fw2 = 0.10 * jax.random.normal(ks[7], (NC, H), jnp.float32)
    fb2 = 0.10 * jax.random.normal(ks[8], (NC,), jnp.float32)
    params = (w1, b1, w2, b2, fw1, fb1, fw2, fb2)

    ref = jax.block_until_ready(reference_forward(x, params))

    # f32 compute path: tight tolerance (exercises the 2-step batch grid)
    out_f32 = jax.block_until_ready(
        base_cnn_forward(x, params, block_batch=8, compute_dtype=jnp.float32))
    assert out_f32.shape == (B, NC)
    assert jnp.allclose(out_f32, ref, atol=1e-3, rtol=1e-3), (out_f32, ref)

    # bf16 MXU path (f32 accumulation): relaxed tolerance
    out_bf16 = jax.block_until_ready(
        base_cnn_forward(x, params, block_batch=8, compute_dtype=jnp.bfloat16))
    assert jnp.allclose(out_bf16, ref, atol=2e-2, rtol=2e-2), (out_bf16, ref)

    # default block selection path (whole batch in one grid step here)
    out_def = jax.block_until_ready(base_cnn_forward(x, params))
    assert jnp.allclose(out_def, ref, atol=2e-2, rtol=2e-2), (out_def, ref)

    print("KERNEL_OK")
</pallas_src>

<mosaic_0001>
module attributes {stable_mosaic.version = 11 : i64} {
  func.func @_cnn_kernel(%arg0: i32, %arg1: memref<128x3xf32, #tpu.memory_space<vmem>>, %arg2: memref<3x16xf32, #tpu.memory_space<vmem>>, %arg3: memref<1x16xf32, #tpu.memory_space<vmem>>, %arg4: memref<48x32xf32, #tpu.memory_space<vmem>>, %arg5: memref<1x32xf32, #tpu.memory_space<vmem>>, %arg6: memref<128x128xf32, #tpu.memory_space<vmem>>, %arg7: memref<1x128xf32, #tpu.memory_space<vmem>>, %arg8: memref<128x128xf32, #tpu.memory_space<vmem>>, %arg9: memref<1x128xf32, #tpu.memory_space<vmem>>, %arg10: memref<8x128xf32, #tpu.memory_space<vmem>>, %arg11: memref<128x32xf32, #tpu.memory_space<vmem>>) attributes {dimension_semantics = [#tpu.dimension_semantics<parallel>], iteration_bounds = array<i64: 2>, scalar_prefetch = 0 : i64, scratch_operands = 1 : i64, tpu.core_type = #tpu.core_type<tc>, window_params = [{transform_indices = @transform_0, window_bounds = array<i64: 128, 3>}, {pipeline_mode = #tpu.pipeline_mode<synchronous>, transform_indices = @transform_1, window_bounds = array<i64: 3, 16>}, {pipeline_mode = #tpu.pipeline_mode<synchronous>, transform_indices = @transform_2, window_bounds = array<i64: 1, 16>}, {pipeline_mode = #tpu.pipeline_mode<synchronous>, transform_indices = @transform_3, window_bounds = array<i64: 48, 32>}, {pipeline_mode = #tpu.pipeline_mode<synchronous>, transform_indices = @transform_4, window_bounds = array<i64: 1, 32>}, {pipeline_mode = #tpu.pipeline_mode<synchronous>, transform_indices = @transform_5, window_bounds = array<i64: 128, 128>}, {pipeline_mode = #tpu.pipeline_mode<synchronous>, transform_indices = @transform_6, window_bounds = array<i64: 1, 128>}, {pipeline_mode = #tpu.pipeline_mode<synchronous>, transform_indices = @transform_7, window_bounds = array<i64: 128, 128>}, {pipeline_mode = #tpu.pipeline_mode<synchronous>, transform_indices = @transform_8, window_bounds = array<i64: 1, 128>}, {transform_indices = @transform_9, window_bounds = array<i64: 8, 128>}]} {
    %0 = tpu.iota {dimensions = array<i32: 0>} : vector<128x1xi32>
    %c16_i32 = arith.constant 16 : i32
    %1 = vector.broadcast %c16_i32 : i32 to vector<128x1xi32>
    %2 = arith.remsi %0, %1 : vector<128x1xi32>
    %c0 = arith.constant 0 : index
    %c0_0 = arith.constant 0 : index
    %3 = vector.load %arg1[%c0, %c0_0] : memref<128x3xf32, #tpu.memory_space<vmem>>, vector<128x3xf32>
    %c0_1 = arith.constant 0 : index
    %c0_2 = arith.constant 0 : index
    %4 = vector.load %arg2[%c0_1, %c0_2] : memref<3x16xf32, #tpu.memory_space<vmem>>, vector<3x16xf32>
    %cst = arith.constant dense<0.000000e+00> : vector<128x16xf32>
    %5 = tpu.matmul %3, %4, %cst {dimension_numbers = #tpu.dot_dimension_numbers<[1], [0], [0], [1], [0, 0, 1, 1], [], []>} : vector<128x3xf32>, vector<3x16xf32>, vector<128x16xf32> -> vector<128x16xf32>
    %c0_3 = arith.constant 0 : index
    %c0_4 = arith.constant 0 : index
    %6 = vector.load %arg3[%c0_3, %c0_4] : memref<1x16xf32, #tpu.memory_space<vmem>>, vector<1x16xf32>
    %7 = vector.broadcast %6 : vector<1x16xf32> to vector<128x16xf32>
    %8 = arith.addf %5, %7 : vector<128x16xf32>
    %cst_5 = arith.constant 0.000000e+00 : f32
    %9 = vector.broadcast %cst_5 : f32 to vector<128x16xf32>
    %10 = arith.maximumf %8, %9 : vector<128x16xf32>
    %c127_i32 = arith.constant 127 : i32
    %11 = tpu.dynamic_rotate %10 by %c127_i32 dim 0 : vector<128x16xf32>, i32 -> vector<128x16xf32>
    %12 = arith.maximumf %10, %11 : vector<128x16xf32>
    %c2_i32 = arith.constant 2 : i32
    %13 = vector.broadcast %c2_i32 : i32 to vector<128x1xi32>
    %14 = arith.cmpi sge, %2, %13 : vector<128x1xi32>
    %c2_i32_6 = arith.constant 2 : i32
    %15 = tpu.dynamic_rotate %12 by %c2_i32_6 dim 0 : vector<128x16xf32>, i32 -> vector<128x16xf32>
    %cst_7 = arith.constant 0.000000e+00 : f32
    %16 = vector.shape_cast %14 : vector<128x1xi1> to vector<128x1xi1>
    %17 = vector.broadcast %16 : vector<128x1xi1> to vector<128x16xi1>
    %18 = vector.broadcast %cst_7 : f32 to vector<128x16xf32>
    %19 = arith.select %17, %15, %18 : vector<128x16xi1>, vector<128x16xf32>
    %c14_i32 = arith.constant 14 : i32
    %20 = vector.broadcast %c14_i32 : i32 to vector<128x1xi32>
    %21 = arith.cmpi slt, %2, %20 : vector<128x1xi32>
    %c126_i32 = arith.constant 126 : i32
    %22 = tpu.dynamic_rotate %12 by %c126_i32 dim 0 : vector<128x16xf32>, i32 -> vector<128x16xf32>
    %cst_8 = arith.constant 0.000000e+00 : f32
    %23 = vector.shape_cast %21 : vector<128x1xi1> to vector<128x1xi1>
    %24 = vector.broadcast %23 : vector<128x1xi1> to vector<128x16xi1>
    %25 = vector.broadcast %cst_8 : f32 to vector<128x16xf32>
    %26 = arith.select %24, %22, %25 : vector<128x16xi1>, vector<128x16xf32>
    %27 = tpu.concatenate %19, %12, %26 in 1 : vector<128x16xf32>, vector<128x16xf32>, vector<128x16xf32> -> vector<128x48xf32>
    %c0_9 = arith.constant 0 : index
    %c0_10 = arith.constant 0 : index
    %28 = vector.load %arg4[%c0_9, %c0_10] : memref<48x32xf32, #tpu.memory_space<vmem>>, vector<48x32xf32>
    %cst_11 = arith.constant dense<0.000000e+00> : vector<128x32xf32>
    %29 = tpu.matmul %27, %28, %cst_11 {dimension_numbers = #tpu.dot_dimension_numbers<[1], [0], [0], [1], [0, 0, 1, 1], [], []>} : vector<128x48xf32>, vector<48x32xf32>, vector<128x32xf32> -> vector<128x32xf32>
    %c0_12 = arith.constant 0 : index
    %c0_13 = arith.constant 0 : index
    %30 = vector.load %arg5[%c0_12, %c0_13] : memref<1x32xf32, #tpu.memory_space<vmem>>, vector<1x32xf32>
    %31 = vector.broadcast %30 : vector<1x32xf32> to vector<128x32xf32>
    %32 = arith.addf %29, %31 : vector<128x32xf32>
    %cst_14 = arith.constant 0.000000e+00 : f32
    %33 = vector.broadcast %cst_14 : f32 to vector<128x32xf32>
    %34 = arith.maximumf %32, %33 : vector<128x32xf32>
    %c126_i32_15 = arith.constant 126 : i32
    %35 = tpu.dynamic_rotate %34 by %c126_i32_15 dim 0 : vector<128x32xf32>, i32 -> vector<128x32xf32>
    %36 = arith.maximumf %34, %35 : vector<128x32xf32>
    %c0_16 = arith.constant 0 : index
    %c0_17 = arith.constant 0 : index
    %37 = vector.load %arg11[%c0_16, %c0_17] : memref<128x32xf32, #tpu.memory_space<vmem>>, vector<128x32xf32>
    tpu.vector_store %arg11[%c0_16, %c0_17], %36 {strides = array<i32>} : memref<128x32xf32, #tpu.memory_space<vmem>>, vector<128x32xf32>,
    %c0_18 = arith.constant 0 : index
    %c0_19 = arith.constant 0 : index
    %38 = tpu.strided_load %arg11[%c0_18, %c0_19] {strides = array<i32: 16, 1>} : memref<128x32xf32, #tpu.memory_space<vmem>>, vector<8x32xf32>
    %c4 = arith.constant 4 : index
    %c0_20 = arith.constant 0 : index
    %39 = tpu.strided_load %arg11[%c4, %c0_20] {strides = array<i32: 16, 1>} : memref<128x32xf32, #tpu.memory_space<vmem>>, vector<8x32xf32>
    %c8 = arith.constant 8 : index
    %c0_21 = arith.constant 0 : index
    %40 = tpu.strided_load %arg11[%c8, %c0_21] {strides = array<i32: 16, 1>} : memref<128x32xf32, #tpu.memory_space<vmem>>, vector<8x32xf32>
    %c12 = arith.constant 12 : index
    %c0_22 = arith.constant 0 : index
    %41 = tpu.strided_load %arg11[%c12, %c0_22] {strides = array<i32: 16, 1>} : memref<128x32xf32, #tpu.memory_space<vmem>>, vector<8x32xf32>
    %42 = tpu.concatenate %38, %39, %40, %41 in 1 : vector<8x32xf32>, vector<8x32xf32>, vector<8x32xf32>, vector<8x32xf32> -> vector<8x128xf32>
    %c0_23 = arith.constant 0 : index
    %c0_24 = arith.constant 0 : index
    %43 = vector.load %arg6[%c0_23, %c0_24] : memref<128x128xf32, #tpu.memory_space<vmem>>, vector<128x128xf32>
    %cst_25 = arith.constant dense<0.000000e+00> : vector<8x128xf32>
    %44 = tpu.matmul %42, %43, %cst_25 {dimension_numbers = #tpu.dot_dimension_numbers<[1], [0], [0], [1], [0, 0, 1, 1], [], []>} : vector<8x128xf32>, vector<128x128xf32>, vector<8x128xf32> -> vector<8x128xf32>
    %c0_26 = arith.constant 0 : index
    %c0_27 = arith.constant 0 : index
    %45 = vector.load %arg7[%c0_26, %c0_27] : memref<1x128xf32, #tpu.memory_space<vmem>>, vector<1x128xf32>
    %46 = vector.broadcast %45 : vector<1x128xf32> to vector<8x128xf32>
    %47 = arith.addf %44, %46 : vector<8x128xf32>
    %cst_28 = arith.constant 0.000000e+00 : f32
    %48 = vector.broadcast %cst_28 : f32 to vector<8x128xf32>
    %49 = arith.maximumf %47, %48 : vector<8x128xf32>
    %c0_29 = arith.constant 0 : index
    %c0_30 = arith.constant 0 : index
    %50 = vector.load %arg8[%c0_29, %c0_30] : memref<128x128xf32, #tpu.memory_space<vmem>>, vector<128x128xf32>
    %cst_31 = arith.constant dense<0.000000e+00> : vector<8x128xf32>
    %51 = tpu.matmul %49, %50, %cst_31 {dimension_numbers = #tpu.dot_dimension_numbers<[1], [0], [0], [1], [0, 0, 1, 1], [], []>} : vector<8x128xf32>, vector<128x128xf32>, vector<8x128xf32> -> vector<8x128xf32>
    %c0_32 = arith.constant 0 : index
    %c0_33 = arith.constant 0 : index
    %52 = vector.load %arg9[%c0_32, %c0_33] : memref<1x128xf32, #tpu.memory_space<vmem>>, vector<1x128xf32>
    %53 = vector.broadcast %52 : vector<1x128xf32> to vector<8x128xf32>
    %54 = arith.addf %51, %53 : vector<8x128xf32>
    %c0_34 = arith.constant 0 : index
    %c0_35 = arith.constant 0 : index
    %55 = vector.load %arg10[%c0_34, %c0_35] : memref<8x128xf32, #tpu.memory_space<vmem>>, vector<8x128xf32>
    tpu.vector_store %arg10[%c0_34, %c0_35], %54 {strides = array<i32>} : memref<8x128xf32, #tpu.memory_space<vmem>>, vector<8x128xf32>,
    return
  }
  func.func @transform_0(%arg0: i32) -> (i32, i32) {
    %c0_i32 = arith.constant 0 : i32
    %c0_i32_0 = arith.constant 0 : i32
    return %arg0, %c0_i32 : i32, i32
  }
  func.func @transform_1(%arg0: i32) -> (i32, i32) {
    %c0_i32 = arith.constant 0 : i32
    %c0_i32_0 = arith.constant 0 : i32
    %c0_i32_1 = arith.constant 0 : i32
    return %c0_i32, %c0_i32_0 : i32, i32
  }
  func.func @transform_2(%arg0: i32) -> (i32, i32) {
    %c0_i32 = arith.constant 0 : i32
    %c0_i32_0 = arith.constant 0 : i32
    %c0_i32_1 = arith.constant 0 : i32
    return %c0_i32, %c0_i32_0 : i32, i32
  }
  func.func @transform_3(%arg0: i32) -> (i32, i32) {
    %c0_i32 = arith.constant 0 : i32
    %c0_i32_0 = arith.constant 0 : i32
    %c0_i32_1 = arith.constant 0 : i32
    return %c0_i32, %c0_i32_0 : i32, i32
  }
  func.func @transform_4(%arg0: i32) -> (i32, i32) {
    %c0_i32 = arith.constant 0 : i32
    %c0_i32_0 = arith.constant 0 : i32
    %c0_i32_1 = arith.constant 0 : i32
    return %c0_i32, %c0_i32_0 : i32, i32
  }
  func.func @transform_5(%arg0: i32) -> (i32, i32) {
    %c0_i32 = arith.constant 0 : i32
    %c0_i32_0 = arith.constant 0 : i32
    %c0_i32_1 = arith.constant 0 : i32
    return %c0_i32, %c0_i32_0 : i32, i32
  }
  func.func @transform_6(%arg0: i32) -> (i32, i32) {
    %c0_i32 = arith.constant 0 : i32
    %c0_i32_0 = arith.constant 0 : i32
    %c0_i32_1 = arith.constant 0 : i32
    return %c0_i32, %c0_i32_0 : i32, i32
  }
  func.func @transform_7(%arg0: i32) -> (i32, i32) {
    %c0_i32 = arith.constant 0 : i32
    %c0_i32_0 = arith.constant 0 : i32
    %c0_i32_1 = arith.constant 0 : i32
    return %c0_i32, %c0_i32_0 : i32, i32
  }
  func.func @transform_8(%arg0: i32) -> (i32, i32) {
    %c0_i32 = arith.constant 0 : i32
    %c0_i32_0 = arith.constant 0 : i32
    %c0_i32_1 = arith.constant 0 : i32
    return %c0_i32, %c0_i32_0 : i32, i32
  }
  func.func @transform_9(%arg0: i32) -> (i32, i32) {
    %c0_i32 = arith.constant 0 : i32
    %c0_i32_0 = arith.constant 0 : i32
    return %arg0, %c0_i32 : i32, i32
  }
}

</mosaic_0001>

<bundles_post_ra>
// kernel: tpu_custom_call.1
= control target key start
LH: loop header
LB: loop body
LE: loop exit
PB: predicated region body
PF: predicated region fallthrough
CT: control target
= control target key end

     0   :  { %s2348_s0 = inlined_call_operand.vmem [shape: f32[256,3], index: 0, kind: input, shape index: {}]   ;;  %s2349_s1 = inlined_call_operand.vmem [shape: f32[3,16], index: 1, kind: input, shape index: {}]   ;;  %s2350_s2 = inlined_call_operand.vmem [shape: f32[1,16], index: 2, kind: input, shape index: {}]   ;;  %s2351_s3 = inlined_call_operand.vmem [shape: f32[48,32], index: 3, kind: input, shape index: {}]   ;;  %s2352_s4 = inlined_call_operand.vmem [shape: f32[1,32], index: 4, kind: input, shape index: {}]   ;;  %s2353_s5 = inlined_call_operand.vmem [shape: f32[128,128], index: 5, kind: input, shape index: {}]   ;;  %s2354_s6 = inlined_call_operand.vmem [shape: f32[1,128], index: 6, kind: input, shape index: {}]   ;;  %s2355_s7 = inlined_call_operand.vmem [shape: f32[128,128], index: 7, kind: input, shape index: {}]   ;;  %s2356_s8 = inlined_call_operand.vmem [shape: f32[1,128], index: 8, kind: input, shape index: {}]   ;;  %s2357_s9 = inlined_call_operand.hbm [shape: f32[16,128], index: 9, kind: output, shape index: {}]  }
   0x1   :  { %2358 = sst [smem:[#allocation6_spill]] %s2348_s0 }
   0x2   :  { %14 = vsyncpa [#allocation4], 0 }
   0x3   :  { %16 = vsyncpa [#allocation4 + $0x1], 0  ;;  %s1647_s30 = smov 0   ;;  %s1649_s10 = smov 0  }
   0x4   :  { %s1651_s11 = smov 0   ;;  %s1653_s12 = smov 0  }
   0x5 LB: > { %s1668_s13 = sadd.s32 4294967295, %s1591_s12   ;;  %s1431_s14 = sadd.s32 4294967294, %s1591_s12   ;;  %s1591_s12 = sphi %s1653_s12, %s2369_s12   ;;  %s1587_s11 = sphi %s1651_s11, %s2368_s11   ;;  %s1583_s10 = sphi %s1649_s10, %s2367_s10   ;;  %s1579_s30 = sphi %s1647_s30, %s2366_s30  }
   0x6   : > { %s1672_s15 = sadd.s32 1, %s1591_s12   ;;  %s223_s16 = sadd.s32 1, %s1587_s11 }
   0x7   : > { %s220_s17 = ssub.s32 %s1591_s12, %s1672_s15  ;;  %p233_p0 = scmp.ne.s32.totalorder %s1587_s11, %s1583_s10 }
   0x8   : > { %p221_p1 = scmp.eq.s32.totalorder %s220_s17, 0  ;;  %p234_p2 = scmp.eq.s32.totalorder %s1668_s13, 1 }
   0x9   : > { %p239_p3 = scmp.ne.s32.totalorder %s1583_s10, %s1579_s30  ;;  %p240_p4 = scmp.eq.s32.totalorder %s1431_s14, 1 }
   0xa   : > { %s1683_s18 = scalar_select %p221_p1, %s1587_s11, %s223_s16  }
   0xb   : > { %p1685_p5 = por %p234_p2, %p233_p0  ;;  %p1689_p6 = por %p240_p4, %p239_p3 }
   0xc   : > { %p1434_p7 = scmp.ge.s32.totalorder %s1591_s12, 1  ;;  %p291_p8 = scmp.lt.s32.totalorder %s1591_s12, 3 }
   0xe   : > { %p292_p9 = pnand %p1434_p7, %p291_p8 }
   0xf   : > { %s1436_s23 = sshll.u32 (!%p292_p9), %s1668_s13, 4  ;;  %s2361_s0 = sld [smem:[#allocation6_spill]] (!%p292_p9) }
  0x10   : > { %295 = sbr.rel (%p292_p9) target bundleno = 922 (0x39a), region = 56  ;;  %p328_p10 = scmp.lt.s32.totalorder (!%p292_p9), %s1436_s23, 31 }
  0x11   : > { %s1593_s14 = smov (!%p292_p9), 16   ;;  %s1594_s16 = smov (!%p292_p9), 32  }
  0x12   : > { %s1595_s17 = smov (!%p292_p9), 96   ;;  %s1596_s21 = smov (!%p292_p9), 64  }
  0x13   : > { %s1549_s25 = scalar_lea.hbm (!%p292_p9), %s2357_s9, 16 }
  0x15   : > { %v478_v0 = vld [vmem:[%s2349_s1] sm:$0x7]  ;;  %vm532_vm0 = vcmask 1042432   ;;  %s2371_s23 = smov (!%p328_p10, %s1436_s23), 31  ;;  %vm483_vm1 = vcmask 23552   ;;  %v333_v19 = vlaneseq  ;;  %vm1005_vm14 = vcmask 261120  }
  0x16   : > { %1438 = vmatpush.msk.msra.mxu0 %vm532_vm0, %v478_v0  ;;  %1475 = vmatpush.msk.msra.mxu3 %vm532_vm0, %v478_v0  ;;  %s1437_s24 = sshll.u32 %s2371_s23, 3  ;;  %v1739_v18 = vld [vmem:[%s2350_s2] ss:$0 sm:$0xff]  ;;  %vm988_vm15 = vcmask 130048   ;;  %vm1032_vm0 = vcmask 392192   ;;  %s1472_s23 = sshll.u32 %s1668_s13, 3 }
  0x17   : > { %s1702_s27 = scalar_lea.vmem %s2361_s0, %s1437_s24  ;;  %v1742_v23 = vshrl.u32 %v333_v19, 7  ;;  %s1367_s26 = scalar_lea.hbm %s2357_s9, %s1472_s23 }
  0x18   : > { %v462_v1 = vld [vmem:[%s1702_s27] sm:$0xff]  ;;  %v472_v2 = vld [vmem:[%s1702_s27 + $0x50] sm:$0xff]  ;;  %v463_v3 = vld [vmem:[%s1702_s27 + $0x8] sm:$0xff] }
  0x19   : > { %1439 = vmatmul.msk.f32.vlgmr.msra.gmra.mxu0 %vm483_vm1, %v462_v1  ;;  %1449 = vmatmul.msk.f32.vlgmr.msra.gmra.mxu3 %vm483_vm1, %v472_v2  ;;  %v473_v4 = vld [vmem:[%s1702_s27 + $0x58] sm:$0xff]  ;;  %v464_v5 = vld [vmem:[%s1702_s27 + $0x10] sm:$0xff]  ;;  %v474_v6 = vld [vmem:[%s1702_s27 + $0x60] sm:$0xff]  ;;  %vm633_vm2 = vcmp.lt.s32.totalorder %v1742_v23, 7  ;;  %vm795_vm3 = vcmp.lt.s32.totalorder %v1742_v23, 6  ;;  %v335_v51 = vadd.s32 8, %v1742_v23 }
  0x1a   : > { %v465_v7 = vld [vmem:[%s1702_s27 + $0x18] sm:$0xff]  ;;  %v475_v8 = vld [vmem:[%s1702_s27 + $0x68] sm:$0xff]  ;;  %v466_v9 = vld [vmem:[%s1702_s27 + $0x20] sm:$0xff]  ;;  %vm698_vm4 = vcmp.lt.s32.totalorder %v1742_v23, 2 }
  0x1b   : > { %v476_v10 = vld [vmem:[%s1702_s27 + $0x70] sm:$0xff]  ;;  %v467_v11 = vld [vmem:[%s1702_s27 + $0x28] sm:$0xff]  ;;  %v477_v12 = vld [vmem:[%s1702_s27 + $0x78] sm:$0xff]  ;;  %v361_v0 = vand.u32 15, %v335_v51 }
  0x1c   : > { %v468_v13 = vld [vmem:[%s1702_s27 + $0x30] sm:$0xff]  ;;  %v469_v14 = vld [vmem:[%s1702_s27 + $0x38] sm:$0xff]  ;;  %v470_v15 = vld [vmem:[%s1702_s27 + $0x40] sm:$0xff] }
  0x1d   : > { %v471_v16 = vld [vmem:[%s1702_s27 + $0x48] sm:$0xff]  ;;  %vm764_vm5 = vcmp.lt.s32.totalorder %v361_v0, 14 }
  0x21   : > { %1440 = vmatmul.msk.f32.gmra.mxu0 %vm483_vm1, %v463_v3  ;;  %1450 = vmatmul.msk.f32.gmra.mxu3 %vm483_vm1, %v473_v4 }
  0x29   : > { %1441 = vmatmul.msk.f32.gmra.mxu0 %vm483_vm1, %v464_v5  ;;  %1451 = vmatmul.msk.f32.gmra.mxu3 %vm483_vm1, %v474_v6 }
  0x31   : > { %1442 = vmatmul.msk.f32.gmra.mxu0 %vm483_vm1, %v465_v7  ;;  %1452 = vmatmul.msk.f32.gmra.mxu3 %vm483_vm1, %v475_v8 }
  0x39   : > { %1443 = vmatmul.msk.f32.gmra.mxu0 %vm483_vm1, %v466_v9  ;;  %1453 = vmatmul.msk.f32.gmra.mxu3 %vm483_vm1, %v476_v10 }
  0x41   : > { %1444 = vmatmul.msk.f32.gmra.mxu0 %vm483_vm1, %v467_v11  ;;  %1454 = vmatmul.msk.f32.gmra.mxu3 %vm483_vm1, %v477_v12 }
  0x49   : > { %1445 = vmatmul.msk.f32.gmra.mxu0 %vm483_vm1, %v468_v13 }
  0x51   : > { %1446 = vmatmul.msk.f32.gmra.mxu0 %vm483_vm1, %v469_v14 }
  0x59   : > { %1447 = vmatmul.msk.f32.gmra.mxu0 %vm483_vm1, %v470_v15 }
  0x61   : > { %1448 = vmatmul.msk.f32.gmra.mxu0 %vm483_vm1, %v471_v16 }
  0x96   : > { %v553_v17 = vpop.f32.mrf.mxu0 }
  0x97   : > { %v554_v20 = vadd.f32 %v1739_v18, %v553_v17 }
  0x99   : > { %v601_v24 = vmax.f32 %v554_v20, 0.0 }
  0x9b   : > { %v1747_v28 = vrot.slane %v601_v24, 1 }
  0x9c   : > { %v583_v21 = vpop.f32.mrf.mxu3 }
  0x9d   : > { %v584_v25 = vadd.f32 %v1739_v18, %v583_v21 }
  0x9e   : > { %v556_v22 = vpop.f32.mrf.mxu0 }
  0x9f   : > { %v557_v26 = vadd.f32 %v1739_v18, %v556_v22  ;;  %v611_v29 = vmax.f32 %v584_v25, 0.0 }
  0xa1   : > { %v602_v27 = vmax.f32 %v557_v26, 0.0  ;;  %v1755_v36 = vrot.slane %v611_v29, 1 }
  0xa3   : > { %v618_v30 = vrot.slane %v602_v27, 1 }
  0xa4   : > { %v586_v31 = vpop.f32.mrf.mxu3 }
  0xa5   : > { %v587_v32 = vadd.f32 %v1739_v18, %v586_v31  ;;  %v648_v33 = vsel %vm633_vm2, %v1747_v28, %v618_v30 }
  0xa6   : > { %v559_v34 = vpop.f32.mrf.mxu0  ;;  %v1753_v35 = vmax.f32 %v601_v24, %v648_v33 }
  0xa7   : > { %v612_v37 = vmax.f32 %v587_v32, 0.0  ;;  %v560_v38 = vadd.f32 %v1739_v18, %v559_v34  ;;  %v337_v32 = vadd.s32 24, %v1742_v23 }
  0xa8   : > { %876 = vrot.lane.b32.xlu0 %v1753_v35, %s1593_s14  ;;  %v682_v52 = vrot.slane %v1753_v35, 6  ;;  %v779_v53 = vrot.slane %v1753_v35, 2 }
  0xa9   : > { %v628_v39 = vrot.slane %v612_v37, 1  ;;  %v603_v40 = vmax.f32 %v560_v38, 0.0 }
  0xab   : > { %v619_v41 = vrot.slane %v603_v40, 1  ;;  %v638_v42 = vsel %vm633_vm2, %v1755_v36, %v628_v39 }
  0xac   : > { %v589_v43 = vpop.f32.mrf.mxu3  ;;  %v1763_v44 = vmax.f32 %v611_v29, %v638_v42 }
  0xad   : > { %v590_v45 = vadd.f32 %v1739_v18, %v589_v43  ;;  %v647_v46 = vsel %vm633_vm2, %v618_v30, %v619_v41 }
  0xae   : > { %896 = vrot.lane.b32.xlu2 %v1763_v44, %s1593_s14  ;;  %v562_v47 = vpop.f32.mrf.mxu0  ;;  %v651_v48 = vmax.f32 %v602_v27, %v647_v46  ;;  %v692_v3 = vrot.slane %v1763_v44, 6  ;;  %v345_v27 = vadd.s32 88, %v1742_v23 }
  0xaf   : > { %v613_v49 = vmax.f32 %v590_v45, 0.0  ;;  %v563_v50 = vadd.f32 %v1739_v18, %v562_v47  ;;  %v375_v47 = vand.u32 15, %v337_v32 }
  0xb0   : > { %878 = vrot.lane.b32.xlu1 %v651_v48, %s1593_s14  ;;  %v780_v54 = vrot.slane %v651_v48, 2  ;;  %v683_v55 = vrot.slane %v651_v48, 6 }
  0xb1   : > { %v629_v56 = vrot.slane %v613_v49, 1  ;;  %v604_v57 = vmax.f32 %v563_v50, 0.0  ;;  %vm1867_vm7 = vcmp.lt.s32.totalorder %v375_v47, 14 }
  0xb2   : > { %v810_v58 = vsel %vm795_vm3, %v779_v53, %v780_v54  ;;  %v1785_v59 = vsel %vm698_vm4, %v682_v52, %v683_v55 }
  0xb3   : > { %v620_v60 = vrot.slane %v604_v57, 1  ;;  %940 = vrot.lane.b32.xlu0 %v810_v58, %s1594_s16  ;;  %v637_v61 = vsel %vm633_vm2, %v628_v39, %v629_v56  ;;  %v431_v39 = vand.u32 15, %v345_v27 }
  0xb4   : > { %v592_v62 = vpop.f32.mrf.mxu3  ;;  %v1790_v63 = vmax.f32 %v612_v37, %v637_v61  ;;  %v789_v61 = vrot.slane %v1763_v44, 2 }
  0xb5   : > { %v646_v1 = vsel %vm633_vm2, %v619_v41, %v620_v60  ;;  %v593_v2 = vadd.f32 %v1739_v18, %v592_v62  ;;  %vm1856_vm6 = vcmp.lt.s32.totalorder %v431_v39, 14 }
  0xb6   : > { %v1796_v4 = vmax.f32 %v603_v40, %v646_v1  ;;  %v565_v5 = vpop.f32.mrf.mxu0  ;;  %v693_v6 = vrot.slane %v1790_v63, 6  ;;  %v790_v50 = vrot.slane %v1790_v63, 2 }
  0xb7   : > { %v614_v7 = vmax.f32 %v593_v2, 0.0  ;;  %v566_v8 = vadd.f32 %v1739_v18, %v565_v5 }
  0xb8   : > { %v781_v9 = vrot.slane %v1796_v4, 2  ;;  %v1805_v10 = vsel %vm698_vm4, %v692_v3, %v693_v6  ;;  %v684_v13 = vrot.slane %v1796_v4, 6 }
  0xb9   : > { %v630_v11 = vrot.slane %v614_v7, 1  ;;  %v605_v12 = vmax.f32 %v566_v8, 0.0 }
  0xba   : > { %v809_v14 = vsel %vm795_vm3, %v780_v54, %v781_v9  ;;  %v1818_v19 = vsel %vm698_vm4, %v683_v55, %v684_v13 }
  0xbb   : > { %v636_v15 = vsel %vm633_vm2, %v629_v56, %v630_v11  ;;  %v621_v16 = vrot.slane %v605_v12, 1  ;;  %898 = vrot.lane.b32.xlu0 %v1790_v63, %s1593_s14  ;;  %v845_v17 = vsel %vm764_vm5, %v809_v14, 0.0 }
  0xbc   : > { %v1820_v20 = vmax.f32 %v613_v49, %v636_v15  ;;  %v595_v21 = vpop.f32.mrf.mxu3  ;;  %942 = vrot.lane.b32.xlu1 %v845_v17, %s1594_s16 }
  0xbd   : > { %v596_v22 = vadd.f32 %v1739_v18, %v595_v21  ;;  %v645_v24 = vsel %vm633_vm2, %v620_v60, %v621_v16 }
  0xbe   : > { %v568_v25 = vpop.f32.mrf.mxu0  ;;  %v1826_v26 = vmax.f32 %v604_v57, %v645_v24  ;;  %v694_v29 = vrot.slane %v1820_v20, 6  ;;  %v791_v43 = vrot.slane %v1820_v20, 2 }
  0xbf   : > { %v615_v30 = vmax.f32 %v596_v22, 0.0  ;;  %v569_v31 = vadd.f32 %v1739_v18, %v568_v25 }
  0xc0   : > { %v685_v33 = vrot.slane %v1826_v26, 6  ;;  %v1835_v34 = vsel %vm698_vm4, %v693_v6, %v694_v29  ;;  %v799_v58 = vsel %vm795_vm3, %v790_v50, %v791_v43  ;;  %v782_v63 = vrot.slane %v1826_v26, 2 }
  0xc1   : > { %v631_v37 = vrot.slane %v615_v30, 1  ;;  %v606_v38 = vmax.f32 %v569_v31, 0.0  ;;  %v800_v6 = vsel %vm795_vm3, %v789_v61, %v790_v50  ;;  %v855_v8 = vsel %vm1856_vm6, %v799_v58, 0.0 }
  0xc2   : > { %v1839_v40 = vsel %vm698_vm4, %v684_v13, %v685_v33  ;;  %v808_v35 = vsel %vm795_vm3, %v781_v9, %v782_v63  ;;  %v347_v9 = vadd.s32 104, %v1742_v23 }
  0xc3   : > { %v635_v41 = vsel %vm633_vm2, %v630_v11, %v631_v37  ;;  %v622_v42 = vrot.slane %v606_v38, 1  ;;  %880 = vrot.lane.b32.xlu0 %v1796_v4, %s1593_s14 }
  0xc4   : > { %v1846_v45 = vmax.f32 %v614_v7, %v635_v41  ;;  %v598_v46 = vpop.f32.mrf.mxu3  ;;  %882 = vrot.lane.b32.xlu1 %v1826_v26, %s1593_s14 }
  0xc5   : > { %v644_v48 = vsel %vm633_vm2, %v621_v16, %v622_v42  ;;  %v599_v49 = vadd.f32 %v1739_v18, %v598_v46 }
  0xc6   : > { %v1854_v51 = vmax.f32 %v605_v12, %v644_v48  ;;  %v571_v54 = vpop.f32.mrf.mxu0  ;;  %v695_v60 = vrot.slane %v1846_v45, 6  ;;  %v339_v48 = vadd.s32 40, %v1742_v23 }
  0xc7   : > { %v616_v56 = vmax.f32 %v599_v49, 0.0  ;;  %v572_v57 = vadd.f32 %v1739_v18, %v571_v54 }
  0xc8   : > { %v783_v0 = vrot.slane %v1854_v51, 2  ;;  %v686_v5 = vrot.slane %v1854_v51, 6  ;;  %v1884_v11 = vsel %vm698_vm4, %v694_v29, %v695_v60  ;;  %v389_v58 = vand.u32 15, %v339_v48  ;;  %v1026_v48 = vld [vmem:[%s2351_s3 + $0x20] sm:$0xff] }
  0xc9   : > { %v632_v1 = vrot.slane %v616_v56, 1  ;;  %v607_v2 = vmax.f32 %v572_v57, 0.0 }
  0xca   : > { %v807_v7 = vsel %vm795_vm3, %v782_v63, %v783_v0  ;;  %v1902_v21 = vsel %vm698_vm4, %v685_v33, %v686_v5  ;;  %v792_v63 = vrot.slane %v1846_v45, 2  ;;  %vm768_vm9 = vcmp.lt.s32.totalorder %v389_v58, 14 }
  0xcb   : > { %v634_v12 = vsel %vm633_vm2, %v631_v37, %v632_v1  ;;  %v649_v13 = vsel %vm633_vm2, %v632_v1, %v1747_v28  ;;  %v623_v14 = vrot.slane %v607_v2, 1  ;;  %960 = vrot.lane.b32.xlu0 %v800_v6, %s1594_s16  ;;  %v847_v15 = vsel %vm1867_vm7, %v807_v7, 0.0 }
  0xcc   : > { %v1894_v16 = vmax.f32 %v615_v30, %v634_v12  ;;  %v1896_v17 = vmax.f32 %v616_v56, %v649_v13  ;;  %946 = vrot.lane.b32.xlu2 %v847_v15, %s1594_s16  ;;  %962 = vrot.lane.b32.xlu1 %v855_v8, %s1594_s16  ;;  %v445_v56 = vand.u32 15, %v347_v9  ;;  %v343_v15 = vadd.s32 72, %v1742_v23 }
  0xcd   : > { %v643_v28 = vsel %vm633_vm2, %v622_v42, %v623_v14 }
  0xce   : > { %v697_v22 = vrot.slane %v1896_v17, 6  ;;  %v655_v24 = vmax.f32 %v606_v38, %v643_v28  ;;  %v574_v25 = vpop.f32.mrf.mxu0  ;;  %v794_v26 = vrot.slane %v1896_v17, 2  ;;  %v696_v29 = vrot.slane %v1894_v16, 6 }
  0xcf   : > { %v575_v27 = vadd.f32 %v1739_v18, %v574_v25  ;;  %v793_v57 = vrot.slane %v1894_v16, 2  ;;  %vm776_vm8 = vcmp.lt.s32.totalorder %v445_v56, 14 }
  0xd0   : > { %v784_v30 = vrot.slane %v655_v24, 2  ;;  %v1914_v31 = vsel %vm698_vm4, %v697_v22, %v682_v52  ;;  %v1922_v33 = vsel %vm795_vm3, %v794_v26, %v779_v53  ;;  %v687_v38 = vrot.slane %v655_v24, 6 }
  0xd1   : > { %v608_v32 = vmax.f32 %v575_v27, 0.0  ;;  %v1928_v39 = vsel %vm698_vm4, %v695_v60, %v696_v29  ;;  %v1937_v52 = vsel %vm698_vm4, %v696_v29, %v697_v22  ;;  %v341_v27 = vadd.s32 56, %v1742_v23 }
  0xd2   : > { %v806_v37 = vsel %vm795_vm3, %v783_v0, %v784_v30  ;;  %v1942_v53 = vsel %vm698_vm4, %v686_v5, %v687_v38  ;;  %v797_v5 = vsel %vm795_vm3, %v792_v63, %v793_v57  ;;  %v796_v44 = vsel %vm795_vm3, %v793_v57, %v794_v26  ;;  %v1025_v26 = vld [vmem:[%s2351_s3 + $0x18] sm:$0xff] }
  0xd3   : > { %v624_v41 = vrot.slane %v608_v32, 1  ;;  %948 = vrot.lane.b32.xlu0 %v806_v37, %s1594_s16  ;;  %v857_v12 = vsel %vm776_vm8, %v797_v5, 0.0  ;;  %v354_v57 = vand.u32 15, %v1742_v23 }
  0xd4   : > { %944 = vrot.lane.b32.xlu1 %v808_v35, %s1594_s16 }
  0xd5   : > { %v642_v42 = vsel %vm633_vm2, %v623_v14, %v624_v41  ;;  %vm666_vm13 = vcmp.ge.s32.totalorder %v354_v57, 2 }
  0xd6   : > { %v1946_v46 = vmax.f32 %v607_v2, %v642_v42  ;;  %v577_v47 = vpop.f32.mrf.mxu0 }
  0xd7   : > { %v578_v4 = vadd.f32 %v1739_v18, %v577_v47 }
  0xd8   : > { %v688_v49 = vrot.slane %v1946_v46, 6  ;;  %v785_v60 = vrot.slane %v1946_v46, 2 }
  0xd9   : > { %v609_v50 = vmax.f32 %v578_v4, 0.0 }
  0xda   : > { %v1954_v54 = vsel %vm698_vm4, %v687_v38, %v688_v49  ;;  %v805_v6 = vsel %vm795_vm3, %v784_v30, %v785_v60  ;;  %v417_v30 = vand.u32 15, %v343_v15 }
  0xdb   : > { %v625_v55 = vrot.slane %v609_v50, 1  ;;  %886 = vrot.lane.b32.xlu0 %v655_v24, %s1593_s14 }
  0xdc   : > { %900 = vrot.lane.b32.xlu1 %v1820_v20, %s1593_s14  ;;  %vm772_vm10 = vcmp.lt.s32.totalorder %v417_v30, 14  ;;  %v1023_v20 = vld [vmem:[%s2351_s3 + $0x8] sm:$0xff]  ;;  %v338_v30 = vadd.s32 32, %v1742_v23 }
  0xdd   : > { %v641_v62 = vsel %vm633_vm2, %v624_v41, %v625_v55 }
  0xde   : > { %v1964_v0 = vmax.f32 %v608_v32, %v641_v62  ;;  %v580_v1 = vpop.f32.mrf.mxu0 }
  0xdf   : > { %v581_v2 = vadd.f32 %v1739_v18, %v580_v1  ;;  %v849_v18 = vsel %vm768_vm9, %v805_v6, 0.0  ;;  %vm1272_vm9 = vcmask 785408  }
  0xe0   : > { %v689_v7 = vrot.slane %v1964_v0, 6 }
  0xe1   : > { %v610_v8 = vmax.f32 %v581_v2, 0.0 }
  0xe2   : > { %v1976_v13 = vsel %vm698_vm4, %v688_v49, %v689_v7 }
  0xe3   : > { %v626_v14 = vrot.slane %v610_v8, 1  ;;  %966 = vrot.lane.b32.xlu0 %v857_v12, %s1594_s16  ;;  %v336_v12 = vadd.s32 16, %v1742_v23 }
  0xe4   : > { %950 = vrot.lane.b32.xlu1 %v849_v18, %s1594_s16 }
  0xe5   : > { %v639_v28 = vsel %vm633_vm2, %v626_v14, %v1755_v36  ;;  %v640_v22 = vsel %vm633_vm2, %v625_v55, %v626_v14  ;;  %v403_v36 = vand.u32 15, %v341_v27  ;;  %v349_v55 = vadd.s32 120, %v1742_v23 }
  0xe6   : > { %v658_v24 = vmax.f32 %v609_v50, %v640_v22  ;;  %v659_v25 = vmax.f32 %v610_v8, %v639_v28  ;;  %v368_v18 = vand.u32 15, %v336_v12 }
  0xe7   : > { %vm770_vm11 = vcmp.lt.s32.totalorder %v403_v36, 14  ;;  %v459_v56 = vand.u32 15, %v349_v55  ;;  %v340_v55 = vadd.s32 48, %v1742_v23 }
  0xe8   : > { %v691_v29 = vrot.slane %v659_v25, 6  ;;  %894 = vrot.lane.b32.xlu2 %v659_v25, %s1593_s14  ;;  %v788_v32 = vrot.slane %v659_v25, 2  ;;  %v690_v37 = vrot.slane %v658_v24, 6  ;;  %v787_v41 = vrot.slane %v658_v24, 2 }
  0xe9   : > { %vm778_vm12 = vcmp.lt.s32.totalorder %v459_v56, 14  ;;  %vm668_vm1 = vcmp.ge.s32.totalorder %v368_v18, 2 }
  0xea   : > { %v1992_v38 = vsel %vm698_vm4, %v691_v29, %v692_v3  ;;  %v1998_v35 = vsel %vm698_vm4, %v690_v37, %v691_v29  ;;  %v801_v42 = vsel %vm795_vm3, %v788_v32, %v789_v61  ;;  %v2008_v3 = vsel %vm698_vm4, %v689_v7, %v690_v37  ;;  %v1027_v61 = vld [vmem:[%s2351_s3 + $0x28] sm:$0xff] }
  0xeb   : > { %904 = vrot.lane.b32.xlu0 %v1894_v16, %s1593_s14  ;;  %v786_v16 = vrot.slane %v1964_v0, 2  ;;  %v853_v47 = vsel %vm772_vm10, %v801_v42, 0.0  ;;  %1091 = vmatpush.msra.mxu1 %v1027_v61  ;;  %v802_v49 = vsel %vm795_vm3, %v787_v41, %v788_v32  ;;  %v859_v62 = vsel %vm778_vm12, %v1922_v33, 0.0 }
  0xec   : > { %888 = vrot.lane.b32.xlu1 %v1946_v46, %s1593_s14  ;;  %1476 = vmatpush.msra.mxu2 %v1027_v61  ;;  %v749_v22 = vsel %vm668_vm1, %v1818_v19, 0.0  ;;  %v382_v42 = vand.u32 15, %v338_v30 }
  0xed   : > { %v803_v4 = vsel %vm795_vm3, %v786_v16, %v787_v41  ;;  %1092 = vmatpush.msra.mxu1 %v1026_v48  ;;  %v804_v50 = vsel %vm795_vm3, %v785_v60, %v786_v16 }
  0xee   : > { %v851_v9 = vsel %vm770_vm11, %v803_v4, 0.0  ;;  %1477 = vmatpush.msra.mxu2 %v1026_v48  ;;  %vm670_vm4 = vcmp.ge.s32.totalorder %v382_v42, 2 }
  0xef   : > { %1093 = vmatpush.msra.mxu1 %v1025_v26  ;;  %v751_v61 = vsel %vm670_vm4, %v1902_v21, 0.0 }
  0xf0   : > { %958 = vrot.lane.b32.xlu2 %v853_v47, %s1594_s16  ;;  %1478 = vmatpush.msra.mxu2 %v1025_v26  ;;  %v346_v26 = vadd.s32 96, %v1742_v23 }
  0xf3   : > { %954 = vrot.lane.b32.xlu0 %v851_v9, %s1594_s16 }
  0xf4   : > { %968 = vrot.lane.b32.xlu1 %v796_v44, %s1594_s16 }
  0xf8   : > { %884 = vrot.lane.b32.xlu2 %v1854_v51, %s1593_s14  ;;  %v798_v51 = vsel %vm795_vm3, %v791_v43, %v792_v63  ;;  %v1022_v43 = vld [vmem:[%s2351_s3] sm:$0xff] }
  0xfb   : > { %892 = vrot.lane.b32.xlu0 %v658_v24, %s1593_s14 }
  0xfc   : > { %906 = vrot.lane.b32.xlu1 %v1896_v17, %s1593_s14  ;;  %v1024_v17 = vld [vmem:[%s2351_s3 + $0x10] sm:$0xff] }
  0xfd   : > { %1094 = vmatpush.msra.mxu1 %v1024_v17  ;;  %1479 = vmatpush.msra.mxu2 %v1024_v17 }
  0xff   : > { %1095 = vmatpush.msra.mxu1 %v1023_v20  ;;  %1480 = vmatpush.msra.mxu2 %v1023_v20 }
 0x100   : > { %964 = vrot.lane.b32.xlu2 %v798_v51, %s1594_s16 }
 0x101   : > { %1096 = vmatpush.msra.mxu1 %v1022_v43  ;;  %1481 = vmatpush.msra.mxu2 %v1022_v43 }
 0x104   : > { %956 = vrot.lane.b32.xlu1 %v802_v49, %s1594_s16  ;;  %v438_v49 = vand.u32 15, %v346_v26 }
 0x106   : > { %vm678_vm5 = vcmp.ge.s32.totalorder %v438_v49, 2 }
 0x108   : > { %902 = vrot.lane.b32.xlu2 %v1846_v45, %s1593_s14  ;;  %v747_v45 = vsel %vm666_vm13, %v1914_v31, 0.0  ;;  %v897_v6 = vpop.permute.xlu2 %896 }
 0x110   : > { %952 = vrot.lane.b32.xlu2 %v804_v50, %s1594_s16 }
 0x118   : > { %890 = vrot.lane.b32.xlu2 %v1964_v0, %s1593_s14  ;;  %s324_s14 = sand.u32 1, %s1583_s10  }
 0x119   : > { %s1435_s22 = sshll.u32 %s324_s14, 3 }
 0x11a   : > { %v877_v58 = vpop.permute.xlu0 %876  ;;  %s326_s28 = scalar_lea.vmem [#allocation3], %s1435_s22 }
 0x11b   : > { %v989_v46 = vsel %vm988_vm15, %v747_v45, %v877_v58  ;;  %s1369_s29 = sshll.u32 %s326_s28, 4  ;;  %s1370_s29 = int_to_ptr.vmem [resolvable:$true] %s1369_s29 }
 0x120   : > { %970 = vrot.lane.b32.xlu2 %v859_v62, %s1594_s16  ;;  %v396_v62 = vand.u32 15, %v340_v55 }
 0x122   : > { %v879_v63 = vpop.permute.xlu1 %878  ;;  %vm672_vm6 = vcmp.ge.s32.totalorder %v396_v62, 2 }
 0x123   : > { %v990_v33 = vsel %vm988_vm15, %v1785_v59, %v879_v63  ;;  %v344_v59 = vadd.s32 80, %v1742_v23 }
 0x125   : > { %v941_v60 = vpop.permute.xlu0 %940  ;;  %v424_v32 = vand.u32 15, %v344_v59 }
 0x126   : > { %v1006_v0 = vsel %vm1005_vm14, %v989_v46, %v941_v60  ;;  %v947_v8 = vpop.permute.xlu2 %946 }
 0x127   : > { %1455 = vmatmul.msk.f32.vlgmr.msra.gmra.mxu1 %vm1032_vm0, %v1006_v0  ;;  %vm676_vm2 = vcmp.ge.s32.totalorder %v424_v32, 2  ;;  %v2138_v32 = vld [vmem:[%s2352_s4] ss:$0 sm:$0xff] }
 0x128   : > { %v757_v9 = vsel %vm676_vm2, %v1992_v38, 0.0 }
 0x12d   : > { %v899_v1 = vpop.permute.xlu0 %898 }
 0x12e   : > { %v943_v2 = vpop.permute.xlu1 %942  ;;  %v1000_v38 = vsel %vm988_vm15, %v1805_v10, %v899_v1  ;;  %v759_v10 = vsel %vm678_vm5, %v1835_v34, 0.0  ;;  %v753_v1 = vsel %vm672_vm6, %v1954_v54, 0.0 }
 0x12f   : > { %v1007_v5 = vsel %vm1005_vm14, %v990_v33, %v943_v2 }
 0x130   : > { %1456 = vmatmul.msk.f32.gmra.mxu1 %vm1032_vm0, %v1007_v5 }
 0x135   : > { %v881_v31 = vpop.permute.xlu0 %880 }
 0x136   : > { %v883_v7 = vpop.permute.xlu1 %882  ;;  %v991_v24 = vsel %vm988_vm15, %v749_v22, %v881_v31 }
 0x137   : > { %v992_v19 = vsel %vm988_vm15, %v1839_v40, %v883_v7  ;;  %v342_v7 = vadd.s32 64, %v1742_v23 }
 0x138   : > { %v1009_v47 = vsel %vm1005_vm14, %v992_v19, %v947_v8 }
 0x13d   : > { %v961_v14 = vpop.permute.xlu0 %960 }
 0x13e   : > { %v963_v15 = vpop.permute.xlu1 %962 }
 0x13f   : > { %v1017_v21 = vsel %vm1005_vm14, %v1000_v38, %v963_v15 }
 0x142   : > { %v895_v28 = vpop.permute.xlu2 %894 }
 0x143   : > { %v998_v37 = vsel %vm988_vm15, %v1998_v35, %v895_v28  ;;  %v999_v35 = vsel %vm988_vm15, %v757_v9, %v897_v6 }
 0x144   : > { %v1016_v40 = vsel %vm1005_vm14, %v999_v35, %v961_v14  ;;  %v410_v14 = vand.u32 15, %v342_v7 }
 0x145   : > { %v949_v25 = vpop.permute.xlu0 %948 }
 0x146   : > { %v945_v27 = vpop.permute.xlu1 %944  ;;  %vm674_vm8 = vcmp.ge.s32.totalorder %v410_v14, 2 }
 0x147   : > { %v1008_v29 = vsel %vm1005_vm14, %v991_v24, %v945_v27 }
 0x148   : > { %1457 = vmatmul.msk.f32.gmra.mxu1 %vm1032_vm0, %v1008_v29 }
 0x14a   : > { %v959_v36 = vpop.permute.xlu2 %958 }
 0x14b   : > { %v1015_v41 = vsel %vm1005_vm14, %v998_v37, %v959_v36 }
 0x14c   : > { %1464 = vmatmul.msk.f32.vlgmr.msra.gmra.mxu2 %vm1032_vm0, %v1015_v41 }
 0x14d   : > { %v887_v4 = vpop.permute.xlu0 %886 }
 0x14e   : > { %v901_v16 = vpop.permute.xlu1 %900  ;;  %v994_v50 = vsel %vm988_vm15, %v1942_v53, %v887_v4  ;;  %v348_v53 = vadd.s32 112, %v1742_v23 }
 0x14f   : > { %v1001_v58 = vsel %vm988_vm15, %v759_v10, %v901_v16 }
 0x150   : > { %1458 = vmatmul.msk.f32.gmra.mxu1 %vm1032_vm0, %v1009_v47  ;;  %v452_v33 = vand.u32 15, %v348_v53 }
 0x152   : > { %v885_v44 = vpop.permute.xlu2 %884  ;;  %vm680_vm7 = vcmp.ge.s32.totalorder %v452_v33, 2 }
 0x153   : > { %v993_v48 = vsel %vm988_vm15, %v751_v61, %v885_v44 }
 0x154   : > { %1465 = vmatmul.msk.f32.gmra.mxu2 %vm1032_vm0, %v1016_v40  ;;  %v1010_v17 = vsel %vm1005_vm14, %v993_v48, %v949_v25 }
 0x155   : > { %v967_v20 = vpop.permute.xlu0 %966 }
 0x156   : > { %v951_v51 = vpop.permute.xlu1 %950 }
 0x157   : > { %v1011_v57 = vsel %vm1005_vm14, %v994_v50, %v951_v51 }
 0x158   : > { %1459 = vmatmul.msk.f32.gmra.mxu1 %vm1032_vm0, %v1010_v17 }
 0x15a   : > { %v965_v43 = vpop.permute.xlu2 %964 }
 0x15b   : > { %v1018_v46 = vsel %vm1005_vm14, %v1001_v58, %v965_v43 }
 0x15c   : > { %1466 = vmatmul.msk.f32.gmra.mxu2 %vm1032_vm0, %v1017_v21 }
 0x15d   : > { %v905_v60 = vpop.permute.xlu0 %904 }
 0x15e   : > { %v889_v56 = vpop.permute.xlu1 %888 }
 0x15f   : > { %v995_v34 = vsel %vm988_vm15, %v753_v1, %v889_v56 }
 0x160   : > { %1460 = vmatmul.msk.f32.gmra.mxu1 %vm1032_vm0, %v1011_v57 }
 0x162   : > { %v903_v45 = vpop.permute.xlu2 %902 }
 0x163   : > { %v1002_v0 = vsel %vm988_vm15, %v1884_v11, %v903_v45  ;;  %v761_v11 = vsel %vm680_vm7, %v1928_v39, 0.0  ;;  %v755_v39 = vsel %vm674_vm8, %v2008_v3, 0.0 }
 0x164   : > { %1467 = vmatmul.msk.f32.gmra.mxu2 %vm1032_vm0, %v1018_v46  ;;  %v1019_v6 = vsel %vm1005_vm14, %v1002_v0, %v967_v20  ;;  %v1003_v54 = vsel %vm988_vm15, %v761_v11, %v905_v60 }
 0x165   : > { %v955_v31 = vpop.permute.xlu0 %954 }
 0x166   : > { %v969_v63 = vpop.permute.xlu1 %968 }
 0x167   : > { %v1020_v15 = vsel %vm1005_vm14, %v1003_v54, %v969_v63 }
 0x16a   : > { %v953_v2 = vpop.permute.xlu2 %952 }
 0x16b   : > { %v1012_v5 = vsel %vm1005_vm14, %v995_v34, %v953_v2 }
 0x16c   : > { %1461 = vmatmul.msk.f32.gmra.mxu1 %vm1032_vm0, %v1012_v5  ;;  %1468 = vmatmul.msk.f32.gmra.mxu2 %vm1032_vm0, %v1019_v6 }
 0x16d   : > { %v893_v22 = vpop.permute.xlu0 %892 }
 0x16e   : > { %v907_v8 = vpop.permute.xlu1 %906  ;;  %v997_v27 = vsel %vm988_vm15, %v755_v39, %v893_v22 }
 0x16f   : > { %v1004_v24 = vsel %vm988_vm15, %v1937_v52, %v907_v8 }
 0x172   : > { %v891_v12 = vpop.permute.xlu2 %890 }
 0x173   : > { %v996_v18 = vsel %vm988_vm15, %v1976_v13, %v891_v12 }
 0x174   : > { %1469 = vmatmul.msk.f32.gmra.mxu2 %vm1032_vm0, %v1020_v15  ;;  %v1013_v28 = vsel %vm1005_vm14, %v996_v18, %v955_v31 }
 0x175   : > { %1462 = vmatmul.msk.f32.gmra.mxu1 %vm1032_vm0, %v1013_v28 }
 0x176   : > { %v957_v59 = vpop.permute.xlu1 %956 }
 0x177   : > { %v1014_v29 = vsel %vm1005_vm14, %v997_v27, %v957_v59 }
 0x17a   : > { %v971_v25 = vpop.permute.xlu2 %970 }
 0x17b   : > { %v1021_v13 = vsel %vm1005_vm14, %v1004_v24, %v971_v25 }
 0x17c   : > { %1470 = vmatmul.msk.f32.gmra.mxu2 %vm1032_vm0, %v1021_v13 }
 0x17d   : > { %1463 = vmatmul.msk.f32.gmra.mxu1 %vm1032_vm0, %v1014_v29 }
 0x1a4   : > { %v1098_v30 = vpop.f32.mrf.mxu1 }
 0x1a5   : > { %v1099_v3 = vadd.f32 %v2138_v32, %v1098_v30 }
 0x1a7   : > { %v1146_v37 = vmax.f32 %v1099_v3, 0.0 }
 0x1a9   : > { %v2142_v19 = vrot.slane %v1146_v37, 2 }
 0x1ad   : > { %v1101_v52 = vpop.f32.mrf.mxu1 }
 0x1ae   : > { %v1102_v36 = vadd.f32 %v2138_v32, %v1101_v52 }
 0x1b0   : > { %v1147_v41 = vmax.f32 %v1102_v36, 0.0 }
 0x1b2   : > { %v1163_v42 = vrot.slane %v1147_v41, 2 }
 0x1b4   : > { %v1192_v16 = vsel %vm795_vm3, %v2142_v19, %v1163_v42 }
 0x1b5   : > { %v1194_v47 = vmax.f32 %v1146_v37, %v1192_v16  ;;  %v1288_v16 = vld [vmem:[%s2353_s5 + $0x70] sm:$0xff] }
 0x1b7   : > { %1210 = vst.msk [vmem:[#allocation2] sm:$0xff] %vm1005_vm14, %v1194_v47 }
 0x1c5   : > { %v1104_v4 = vpop.f32.mrf.mxu1 }
 0x1c6   : > { %v1105_v9 = vadd.f32 %v2138_v32, %v1104_v4 }
 0x1c8   : > { %v1148_v35 = vmax.f32 %v1105_v9, 0.0  ;;  %v1287_v9 = vld [vmem:[%s2353_s5 + $0x68] sm:$0xff] }
 0x1ca   : > { %v1164_v44 = vrot.slane %v1148_v35, 2 }
 0x1cc   : > { %v1191_v61 = vsel %vm795_vm3, %v1163_v42, %v1164_v44  ;;  %v1289_v42 = vld [vmem:[%s2353_s5 + $0x78] sm:$0xff] }
 0x1cd   : > { %v1195_v40 = vmax.f32 %v1147_v41, %v1191_v61  ;;  %v1107_v48 = vpop.f32.mrf.mxu1  ;;  %1294 = vmatpush.msrb.mxu2 %v1289_v42  ;;  %v1274_v42 = vld [vmem:[%s2353_s5] sm:$0xff] }
 0x1ce   : > { %v1108_v26 = vadd.f32 %v2138_v32, %v1107_v48  ;;  %v1286_v48 = vld [vmem:[%s2353_s5 + $0x60] sm:$0xff] }
 0x1cf   : > { %1211 = vst.msk [vmem:[#allocation2 + $0x8] sm:$0xff] %vm1005_vm14, %v1195_v40  ;;  %v1125_v51 = vpop.f32.mrf.mxu2  ;;  %1295 = vmatpush.msrb.mxu2 %v1288_v16  ;;  %v1330_v16 = vld [vmem:[%s2355_s7 + $0x78] sm:$0xff] }
 0x1d0   : > { %v1149_v17 = vmax.f32 %v1108_v26, 0.0  ;;  %v1126_v20 = vadd.f32 %v2138_v32, %v1125_v51  ;;  %1335 = vmatpush.msrb.mxu3 %v1330_v16 }
 0x1d1   : > { %1296 = vmatpush.msrb.mxu2 %v1287_v9  ;;  %v1327_v9 = vld [vmem:[%s2355_s7 + $0x60] sm:$0xff] }
 0x1d2   : > { %v1165_v38 = vrot.slane %v1149_v17, 2  ;;  %v1155_v56 = vmax.f32 %v1126_v20, 0.0 }
 0x1d3   : > { %1297 = vmatpush.msrb.mxu2 %v1286_v48  ;;  %v1322_v48 = vld [vmem:[%s2355_s7 + $0x38] sm:$0xff] }
 0x1d4   : > { %v1190_v49 = vsel %vm795_vm3, %v1164_v44, %v1165_v38  ;;  %v2159_v45 = vrot.slane %v1155_v56, 2 }
 0x1d5   : > { %v1196_v43 = vmax.f32 %v1148_v35, %v1190_v49  ;;  %v1110_v21 = vpop.f32.mrf.mxu1  ;;  %v1285_v49 = vld [vmem:[%s2353_s5 + $0x58] sm:$0xff] }
 0x1d6   : > { %v1111_v50 = vadd.f32 %v2138_v32, %v1110_v21  ;;  %v1284_v21 = vld [vmem:[%s2353_s5 + $0x50] sm:$0xff]  ;;  %1298 = vmatpush.msrb.mxu2 %v1285_v49 }
 0x1d7   : > { %1212 = vst.msk [vmem:[#allocation2 + $0x10] sm:$0xff] %vm1005_vm14, %v1196_v43  ;;  %v1128_v55 = vpop.f32.mrf.mxu2 }
 0x1d8   : > { %v1150_v57 = vmax.f32 %v1111_v50, 0.0  ;;  %v1129_v10 = vadd.f32 %v2138_v32, %v1128_v55  ;;  %1299 = vmatpush.msrb.mxu2 %v1284_v21 }
 0x1da   : > { %v1166_v58 = vrot.slane %v1150_v57, 2  ;;  %v1156_v62 = vmax.f32 %v1129_v10, 0.0 }
 0x1dc   : > { %v1189_v46 = vsel %vm795_vm3, %v1165_v38, %v1166_v58  ;;  %v1172_v60 = vrot.slane %v1156_v62, 2 }
 0x1dd   : > { %v1197_v53 = vmax.f32 %v1149_v17, %v1189_v46  ;;  %v1113_v63 = vpop.f32.mrf.mxu1  ;;  %v1282_v46 = vld [vmem:[%s2353_s5 + $0x40] sm:$0xff] }
 0x1de   : > { %v1183_v0 = vsel %vm795_vm3, %v2159_v45, %v1172_v60  ;;  %v1114_v1 = vadd.f32 %v2138_v32, %v1113_v63  ;;  %v1226_v49 = vld [vmem:[#allocation2] ss:$16 sm:$0x3] }
 0x1df   : > { %1213 = vst.msk [vmem:[#allocation2 + $0x18] sm:$0xff] %vm1005_vm14, %v1197_v53  ;;  %v1203_v33 = vmax.f32 %v1155_v56, %v1183_v0  ;;  %v1131_v34 = vpop.f32.mrf.mxu2  ;;  %v1283_v56 = vld [vmem:[%s2353_s5 + $0x48] sm:$0xff] }
 0x1e0   : > { %v1151_v2 = vmax.f32 %v1114_v1, 0.0  ;;  %v1132_v5 = vadd.f32 %v2138_v32, %v1131_v34  ;;  %1300 = vmatpush.msrb.mxu2 %v1283_v56 }
 0x1e1   : > { %1219 = vst.msk [vmem:[#allocation2 + $0x48] sm:$0xff] %vm1005_vm14, %v1203_v33 }
 0x1e2   : > { %v1167_v6 = vrot.slane %v1151_v2, 2  ;;  %v1157_v31 = vmax.f32 %v1132_v5, 0.0  ;;  %1301 = vmatpush.msrb.mxu2 %v1282_v46 }
 0x1e4   : > { %v1188_v7 = vsel %vm795_vm3, %v1166_v58, %v1167_v6  ;;  %v1173_v8 = vrot.slane %v1157_v31, 2 }
 0x1e5   : > { %v1198_v11 = vmax.f32 %v1150_v57, %v1188_v7 }
 0x1e6   : > { %v1182_v54 = vsel %vm795_vm3, %v1172_v60, %v1173_v8 }
 0x1e7   : > { %1214 = vst.msk [vmem:[#allocation2 + $0x20] sm:$0xff] %vm1005_vm14, %v1198_v11  ;;  %v1204_v12 = vmax.f32 %v1156_v62, %v1182_v54  ;;  %v1134_v14 = vpop.f32.mrf.mxu2  ;;  %v1234_v54 = vld [vmem:[#allocation2 + $0x4] ss:$16 sm:$0x3] }
 0x1e8   : > { %v1135_v18 = vadd.f32 %v2138_v32, %v1134_v14 }
 0x1e9   : > { %1220 = vst.msk [vmem:[#allocation2 + $0x50] sm:$0xff] %vm1005_vm14, %v1204_v12  ;;  %v1116_v15 = vpop.f32.mrf.mxu1 }
 0x1ea   : > { %v1158_v28 = vmax.f32 %v1135_v18, 0.0  ;;  %v1117_v22 = vadd.f32 %v2138_v32, %v1116_v15 }
 0x1ec   : > { %v1174_v59 = vrot.slane %v1158_v28, 2  ;;  %v1152_v39 = vmax.f32 %v1117_v22, 0.0 }
 0x1ee   : > { %v1181_v24 = vsel %vm795_vm3, %v1173_v8, %v1174_v59  ;;  %v1168_v25 = vrot.slane %v1152_v39, 2 }
 0x1ef   : > { %v1205_v27 = vmax.f32 %v1157_v31, %v1181_v24  ;;  %v1137_v13 = vpop.f32.mrf.mxu2  ;;  %v1242_v31 = vld [vmem:[#allocation2 + $0x8] ss:$16 sm:$0x3] }
 0x1f0   : > { %v1187_v29 = vsel %vm795_vm3, %v1167_v6, %v1168_v25  ;;  %v1138_v30 = vadd.f32 %v2138_v32, %v1137_v13  ;;  %v1250_v6 = vld [vmem:[#allocation2 + $0xc] ss:$16 sm:$0x3] }
 0x1f1   : > { %1221 = vst.msk [vmem:[#allocation2 + $0x58] sm:$0xff] %vm1005_vm14, %v1205_v27  ;;  %v1199_v3 = vmax.f32 %v1151_v2, %v1187_v29 }
 0x1f2   : > { %v1159_v52 = vmax.f32 %v1138_v30, 0.0  ;;  %v1119_v37 = vpop.f32.mrf.mxu1  ;;  %v1280_v30 = vld [vmem:[%s2353_s5 + $0x30] sm:$0xff] }
 0x1f3   : > { %1215 = vst.msk [vmem:[#allocation2 + $0x28] sm:$0xff] %vm1005_vm14, %v1199_v3  ;;  %v1120_v36 = vadd.f32 %v2138_v32, %v1119_v37  ;;  %v1279_v3 = vld [vmem:[%s2353_s5 + $0x28] sm:$0xff]  ;;  %v1277_v37 = vld [vmem:[%s2353_s5 + $0x18] sm:$0xff] }
 0x1f4   : > { %v1175_v41 = vrot.slane %v1159_v52, 2 }
 0x1f5   : > { %v1153_v47 = vmax.f32 %v1120_v36, 0.0  ;;  %v1276_v36 = vld [vmem:[%s2353_s5 + $0x10] sm:$0xff] }
 0x1f6   : > { %v1180_v4 = vsel %vm795_vm3, %v1174_v59, %v1175_v41 }
 0x1f7   : > { %v1206_v35 = vmax.f32 %v1158_v28, %v1180_v4  ;;  %v1169_v44 = vrot.slane %v1153_v47, 2  ;;  %v1140_v61 = vpop.f32.mrf.mxu2  ;;  %v1328_v4 = vld [vmem:[%s2355_s7 + $0x68] sm:$0xff] }
 0x1f8   : > { %v1141_v40 = vadd.f32 %v2138_v32, %v1140_v61  ;;  %v1253_v28 = vld [vmem:[#allocation2 + $0xc] ss:$16 sm:$0x30]  ;;  %v1245_v22 = vld [vmem:[#allocation2 + $0x8] ss:$16 sm:$0x30] }
 0x1f9   : > { %1222 = vst.msk [vmem:[#allocation2 + $0x60] sm:$0xff] %vm1005_vm14, %v1206_v35  ;;  %v1186_v26 = vsel %vm795_vm3, %v1168_v25, %v1169_v44  ;;  %v1326_v35 = vld [vmem:[%s2355_s7 + $0x58] sm:$0xff]  ;;  %v1324_v61 = vld [vmem:[%s2355_s7 + $0x48] sm:$0xff] }
 0x1fa   : > { %v1200_v51 = vmax.f32 %v1152_v39, %v1186_v26  ;;  %v1160_v17 = vmax.f32 %v1141_v40, 0.0  ;;  %v1122_v38 = vpop.f32.mrf.mxu1  ;;  %v1323_v40 = vld [vmem:[%s2355_s7 + $0x40] sm:$0xff]  ;;  %v1321_v26 = vld [vmem:[%s2355_s7 + $0x30] sm:$0xff] }
 0x1fb   : > { %v1123_v20 = vadd.f32 %v2138_v32, %v1122_v38  ;;  %v1319_v38 = vld [vmem:[%s2355_s7 + $0x20] sm:$0xff] }
 0x1fc   : > { %1216 = vst.msk [vmem:[#allocation2 + $0x30] sm:$0xff] %vm1005_vm14, %v1200_v51  ;;  %v1176_v43 = vrot.slane %v1160_v17, 2  ;;  %v1320_v51 = vld [vmem:[%s2355_s7 + $0x28] sm:$0xff] }
 0x1fd   : > { %v1154_v50 = vmax.f32 %v1123_v20, 0.0 }
 0x1fe   : > { %v1179_v55 = vsel %vm795_vm3, %v1175_v41, %v1176_v43  ;;  %v1275_v41 = vld [vmem:[%s2353_s5 + $0x8] sm:$0xff] }
 0x1ff   : > { %v1207_v57 = vmax.f32 %v1159_v52, %v1179_v55  ;;  %v1170_v10 = vrot.slane %v1154_v50, 2  ;;  %v1143_v58 = vpop.f32.mrf.mxu2  ;;  %v1278_v52 = vld [vmem:[%s2353_s5 + $0x20] sm:$0xff]  ;;  %v1317_v55 = vld [vmem:[%s2355_s7 + $0x10] sm:$0xff] }
 0x200   : > { %v1144_v62 = vadd.f32 %v2138_v32, %v1143_v58  ;;  %v1281_v32 = vld [vmem:[%s2353_s5 + $0x38] sm:$0xff] }
 0x201   : > { %1223 = vst.msk [vmem:[#allocation2 + $0x68] sm:$0xff] %vm1005_vm14, %v1207_v57  ;;  %v1184_v60 = vsel %vm795_vm3, %v1170_v10, %v2159_v45  ;;  %v1185_v53 = vsel %vm795_vm3, %v1169_v44, %v1170_v10  ;;  %1302 = vmatpush.msrb.mxu2 %v1281_v32  ;;  %v1325_v44 = vld [vmem:[%s2355_s7 + $0x50] sm:$0xff]  ;;  %v1316_v10 = vld [vmem:[%s2355_s7 + $0x8] sm:$0xff] }
 0x202   : > { %v1201_v63 = vmax.f32 %v1153_v47, %v1185_v53  ;;  %v1202_v0 = vmax.f32 %v1154_v50, %v1184_v60  ;;  %v1161_v1 = vmax.f32 %v1144_v62, 0.0  ;;  %v1329_v47 = vld [vmem:[%s2355_s7 + $0x70] sm:$0xff] }
 0x203   : > { %v1235_v7 = vld [vmem:[#allocation2 + $0x4] ss:$16 sm:$0xc]  ;;  %1303 = vmatpush.msrb.mxu2 %v1280_v30  ;;  %1336 = vmatpush.msrb.mxu3 %v1329_v47 }
 0x204   : > { %1217 = vst.msk [vmem:[#allocation2 + $0x38] sm:$0xff] %vm1005_vm14, %v1201_v63  ;;  %v1177_v33 = vrot.slane %v1161_v1, 2  ;;  %v1236_v15 = vor.u32 %v1235_v7, %v1234_v54 }
 0x205   : > { %1218 = vst.msk [vmem:[#allocation2 + $0x40] sm:$0xff] %vm1005_vm14, %v1202_v0  ;;  %1304 = vmatpush.msrb.mxu2 %v1279_v3  ;;  %1337 = vmatpush.msrb.mxu3 %v1328_v4  ;;  %v1315_v0 = vld [vmem:[%s2355_s7] sm:$0xff] }
 0x206   : > { %v1178_v45 = vsel %vm795_vm3, %v1176_v43, %v1177_v33  ;;  %v1193_v34 = vsel %vm795_vm3, %v1177_v33, %v2142_v19  ;;  %v1318_v43 = vld [vmem:[%s2355_s7 + $0x18] sm:$0xff]  ;;  %vm1270_vm3 = vcmask 523264  }
 0x207   : > { %v1208_v2 = vmax.f32 %v1160_v17, %v1178_v45  ;;  %v1209_v5 = vmax.f32 %v1161_v1, %v1193_v34  ;;  %1305 = vmatpush.msrb.mxu2 %v1278_v52  ;;  %1338 = vmatpush.msrb.mxu3 %v1327_v9  ;;  %v1227_v17 = vld [vmem:[#allocation2] ss:$16 sm:$0xc] }
 0x208   : > { %v1228_v21 = vor.u32 %v1227_v17, %v1226_v49  ;;  %v1527_v1 = vld [vmem:[%s2354_s6] ss:$0 sm:$0xff] }
 0x209   : > { %1224 = vst.msk [vmem:[#allocation2 + $0x70] sm:$0xff] %vm1005_vm14, %v1208_v2  ;;  %1306 = vmatpush.msrb.mxu2 %v1277_v37  ;;  %1339 = vmatpush.msrb.mxu3 %v1326_v35  ;;  %v1528_v34 = vld [vmem:[%s2356_s8] ss:$0 sm:$0xff] }
 0x20a   : > { %1225 = vst.msk [vmem:[#allocation2 + $0x78] sm:$0xff] %vm1005_vm14, %v1209_v5 }
 0x20b   : > { %v1251_v8 = vld [vmem:[#allocation2 + $0xc] ss:$16 sm:$0xc]  ;;  %v1243_v11 = vld [vmem:[#allocation2 + $0x8] ss:$16 sm:$0xc]  ;;  %1307 = vmatpush.msrb.mxu2 %v1276_v36  ;;  %1340 = vmatpush.msrb.mxu3 %v1325_v44 }
 0x20c   : > { %v1237_v12 = vld [vmem:[#allocation2 + $0x4] ss:$16 sm:$0x30]  ;;  %v1252_v14 = vor.u32 %v1251_v8, %v1250_v6  ;;  %v1244_v18 = vor.u32 %v1243_v11, %v1242_v31  ;;  %v1229_v20 = vld [vmem:[#allocation2] ss:$16 sm:$0x30] }
 0x20d   : > { %v1238_v59 = vor.u32 %v1237_v12, %v1236_v15  ;;  %1308 = vmatpush.msrb.mxu2 %v1275_v41  ;;  %1341 = vmatpush.msrb.mxu3 %v1324_v61  ;;  %v1230_v56 = vor.u32 %v1229_v20, %v1228_v21 }
 0x20e   : > { %v1254_v23 = vor.u32 %v1253_v28, %v1252_v14  ;;  %v1246_v19 = vor.u32 %v1245_v22, %v1244_v18 }
 0x20f   : > { %1309 = vmatpush.msrb.mxu2 %v1274_v42  ;;  %1342 = vmatpush.msrb.mxu3 %v1323_v40 }
 0x210   : > { %v1239_v39 = vld [vmem:[#allocation2 + $0x4] ss:$16 sm:$0xc0]  ;;  %v1231_v50 = vld [vmem:[#allocation2] ss:$16 sm:$0xc0] }
 0x211   : > { %v1240_v24 = vor.u32 %v1239_v39, %v1238_v59  ;;  %v1255_v25 = vld [vmem:[#allocation2 + $0xc] ss:$16 sm:$0xc0]  ;;  %v1247_v27 = vld [vmem:[#allocation2 + $0x8] ss:$16 sm:$0xc0]  ;;  %1343 = vmatpush.msrb.mxu3 %v1322_v48  ;;  %v1232_v58 = vor.u32 %v1231_v50, %v1230_v56 }
 0x212   : > { %v1256_v13 = vor.u32 %v1255_v25, %v1254_v23  ;;  %v1248_v29 = vor.u32 %v1247_v27, %v1246_v19 }
 0x213   : > { %1258 = vrot.lane.b32.xlu2 %v1240_v24, %s1594_s16  ;;  %1344 = vmatpush.msrb.mxu3 %v1321_v26 }
 0x214   : > { %1266 = vrot.lane.b32.xlu1 %v1256_v13, %s1595_s17  ;;  %1262 = vrot.lane.b32.xlu0 %v1248_v29, %s1596_s21  ;;  %s1371_s17 = sshll.u32 %s1367_s26, 4  ;;  %s1357_s21 = scalar_lea.sflag [#allocation4], %s324_s14  ;;  %s1372_s17 = int_to_ptr.hbm [resolvable:$true] %s1371_s17 }
 0x215   : > { %1345 = vmatpush.msrb.mxu3 %v1320_v51  ;;  %s1543_s0 = sshra.s32 %s1372_s17, 4  ;;  %s1544_s0 = int_to_ptr.hbm [resolvable:$true] %s1543_s0 }
 0x216   : > { %s1545_s13 = scalar_lea.hbm %s1544_s0, 8  ;;  %p1550_p0 = scmp.lt.s32.totalorder %s1544_s0, %s2357_s9 }
 0x217   : > { %1346 = vmatpush.msrb.mxu3 %v1319_v38  ;;  %p1546_p11 = scmp.ne.s32.totalorder %s1544_s0, %s1545_s13  ;;  %p1551_p1 = scmp.lt.s32.totalorder %s1549_s25, %s1545_s13 }
 0x219   : > { %1347 = vmatpush.msrb.mxu3 %v1318_v43  ;;  %p1547_p12 = pnand %p1546_p11, %p1685_p5  ;;  %p1552_p2 = por %p1551_p1, %p1550_p0 }
 0x21b   : > { %1348 = vmatpush.msrb.mxu3 %v1317_v55  ;;  %p1548_p13 = pneg %p1547_p12 }
 0x21d   : > { %1349 = vmatpush.msrb.mxu3 %v1316_v10  ;;  %p1553_p3 = pnand %p1552_p2, %p1548_p13 }
 0x21f   : > { %1350 = vmatpush.msrb.mxu3 %v1315_v0 }
 0x26d   : > { %v1259_v57 = vpop.permute.xlu2 %1258 }
 0x26e   : > { %v1269_v62 = vsel %vm1005_vm14, %v1232_v58, %v1259_v57 }
 0x286   : > { %v1267_v46 = vpop.permute.xlu1 %1266  ;;  %v1263_v60 = vpop.permute.xlu0 %1262 }
 0x287   : > { %v1271_v53 = vsel %vm1270_vm3, %v1269_v62, %v1263_v60 }
 0x288   : > { %v1273_v63 = vsel %vm1272_vm9, %v1271_v53, %v1267_v46 }
 0x289   : > { %1310 = vmatmul.f32.vlgmr.msrb.gmra.mxu2 %v1273_v63 }
 0x30c   : > { %v1311_v32 = vpop.f32.mrf.mxu2 }
 0x30d   : > { %v1312_v33 = vadd.f32 %v1527_v1, %v1311_v32 }
 0x30f   : > { %v1314_v45 = vmax.f32 %v1312_v33, 0.0 }
 0x311   : > { %1351 = vmatmul.f32.vlgmr.msrb.gmra.mxu3 %v1314_v45 }
 0x394   : > { %v1352_v2 = vpop.f32.mrf.mxu3 }
 0x395   : > { %v1353_v5 = vadd.f32 %v1528_v34, %v1352_v2 }
 0x397   : > { %1355 = vst [vmem:[%s326_s28] sm:$0xff] %v1353_v5 }
 0x398   : > { %1556 = shalt.err (!%p1553_p3)
}
 0x399   : > { %1482 = dma.vmem_to_hbm [thread:$0]  (%p1685_p5), %s1370_s29, 128, %s1372_s17, %s1357_s21  }
 0x39a PF: > { %p1488_p4 = scmp.ge.s32.totalorder %s1591_s12, 2  ;;  %s1383_s14 = sand.u32 1, %s1579_s30  }
 0x39b   : > { %s1384_s26 = scalar_lea.sflag [#allocation4], %s1383_s14 }
 0x39c   : > { %p1485_p7 = pnand %p1488_p4, %p1689_p6 }
 0x39e   : > { %p1486_p8 = pneg %p1485_p7 }
 0x3a0   : > { %1574 = dma.done.wait (%p1486_p8), %s1384_s26, 128  }
 0x3a1   : > { %1576 = vsyncadd (%p1486_p8), %s1384_s26, 4294967168  ;;  %p19_p9 = scmp.ge.s32.totalorder %s1672_s15, 4   ;;  %s2366_s30 = smov %s1583_s10 }
 0x3a2   : > { %s2367_s10 = smov %s1587_s11  ;;  %s2368_s11 = smov %s1683_s18 }
 0x3a3   : > { %s2369_s12 = smov %s1672_s15  ;;  %21 = sbr.rel (!%p19_p9) target bundleno = 5 (0x5), region = 94 }
 0x3a8   :  { %1390 = vsyncpa [#allocation4], 1 }
 0x3a9   :  { %1392 = vsyncpa [#allocation4 + $0x1], 1 }

</bundles_post_ra>
